<compile_context>
chip_gen: v5e
topology: v5e:2x2
jax: 0.10.0
libtpu: 0.0.40
codegen_flags: <defaults>
</compile_context>

<pallas_src>
import functools

import jax
import jax.numpy as jnp
from jax.experimental import pallas as pl
from jax.experimental.pallas import tpu as pltpu

EPS = 1e-5


def _row_tile(h, cost_per_row, budget):
    """Largest TH dividing H (multiple of 8, or H itself) with TH * cost_per_row <= budget."""
    if h * cost_per_row <= budget:
        return h
    cands = [t for t in range(8, h, 8) if h % t == 0 and t * cost_per_row <= budget]
    return max(cands) if cands else (8 if h % 8 == 0 else h)


def _vmem_limit_bytes(per_step_bytes):
    # double-buffered blocks + headroom; floor 32 MiB, cap at v7x physical VMEM (64 MiB).
    need = int(per_step_bytes * 2.5) + (8 << 20)
    return int(min(max(need, 32 << 20), 64 << 20))


# --------------------------------------------------------------------------------------
# Pass 1: per-channel batch statistics (single pass: sum and sum-of-squares).
# Grid (N, H//TR): N is "parallel" (megacore), row bands are the sequential reduction.
# Outputs are lane-dense per-image partial sums; the W->Cin fold happens in the wrapper.
# --------------------------------------------------------------------------------------
def _bn_stats_kernel(x_ref, sum_ref, sq_ref):
    x = x_ref[0].astype(jnp.float32)                      # (TR, W*Cin), lane-dense
    s = jnp.sum(x, axis=0, keepdims=True)[None]           # (1, 1, W*Cin)
    q = jnp.sum(x * x, axis=0, keepdims=True)[None]       # (1, 1, W*Cin)

    @pl.when(pl.program_id(1) == 0)
    def _init():
        sum_ref[...] = s
        sq_ref[...] = q

    @pl.when(pl.program_id(1) > 0)
    def _acc():
        sum_ref[...] += s
        sq_ref[...] += q


# --------------------------------------------------------------------------------------
# Pass 2: per-band BN (precomputed scale/shift) + ReLU + 3x3 conv (one MXU matmul) + Tanh.
# --------------------------------------------------------------------------------------
def _render_conv_kernel(x_ref, scale_ref, shift_ref, w_ref, bias_ref, o_ref,
                        *, cin, cout, th, banded):
    # x_ref:     (1, H, W*Cin)   image (resident across the band axis; DMA'd once per image)
    # scale_ref: (1, W*Cin)      gamma * rsqrt(var+eps), tiled W times along lanes
    # shift_ref: (1, W*Cin)      beta - mean*scale, tiled W times
    # w_ref:     banded: (3*(W+2)*Cin, W*Cout) bf16 block-banded conv matrix
    #            im2col: (9*Cin, 128)          bf16 im2col weight matrix (lane-padded Cout)
    # bias_ref:  (1, W*Cout)     conv bias tiled W times along lanes
    # o_ref:     (1, TH, W*Cout) compact f32 output band
    H = x_ref.shape[1]
    W = x_ref.shape[2] // cin
    b = pl.program_id(1)
    nb = pl.num_programs(1)
    r0 = pl.multiple_of(b * th, th)

    scale = scale_ref[...]
    shift = shift_ref[...]

    # ---- per-band BN + ReLU on TH + 2 rows (clamped halo reads; image edges -> exact zeros) ----
    mid = x_ref[0, pl.ds(r0, th), :]                                   # (TH, W*Cin)
    top = x_ref[0, pl.ds(jnp.maximum(r0 - 1, 0), 1), :]                # (1, W*Cin)
    bot = x_ref[0, pl.ds(jnp.minimum(r0 + th, H - 1), 1), :]           # (1, W*Cin)
    a_mid = jnp.maximum(mid * scale + shift, 0.0)
    a_top = jnp.where(b > 0, jnp.maximum(top * scale + shift, 0.0), 0.0)
    a_bot = jnp.where(b < nb - 1, jnp.maximum(bot * scale + shift, 0.0), 0.0)
    zc = jnp.zeros((th + 2, cin), jnp.float32)
    ap = jnp.concatenate(
        [zc, jnp.concatenate([a_top, a_mid, a_bot], axis=0), zc], axis=1)   # (TH+2, (W+2)*Cin)

    if banded:
        # Small-W fast path: one lane-dense matmul, zero lane<->sublane relayouts.
        lhs = jnp.concatenate([ap[0:th], ap[1:th + 1], ap[2:th + 2]], axis=1)   # (TH, 3*(W+2)*Cin)
        acc = jnp.dot(lhs.astype(w_ref.dtype), w_ref[...],
                      preferred_element_type=jnp.float32)                      # (TH, W*Cout)
        y = acc
    else:
        # General path: register-built im2col LHS (no VMEM scratch, no masked stores).
        taps = []
        for t in range(9):
            ky, kx = divmod(t, 3)
            win = ap[ky:ky + th, kx * cin:(kx + W) * cin]                       # (TH, W*Cin)
            taps.append(win.reshape(th * W, cin))
        lhs = jnp.concatenate(taps, axis=1).astype(w_ref.dtype)                 # (TH*W, 9*Cin)
        acc = jnp.dot(lhs, w_ref[...], preferred_element_type=jnp.float32)      # (TH*W, 128)
        y = acc[:, :cout].reshape(th, W * cout)

    o_ref[0] = jnp.tanh(y + bias_ref[...]).astype(o_ref.dtype)                  # f32 epilogue


def render_block_nhwc(x_nhwc, gamma, beta, conv_w_hwio, conv_b, mxu_dtype=jnp.bfloat16):
    """NHWC entry point. Returns (N, H, W, Cout) f32. x may be f32 or bf16."""
    N, H, W, Cin = x_nhwc.shape
    Cout = conv_w_hwio.shape[-1]
    elt = jnp.dtype(x_nhwc.dtype).itemsize
    WC = W * Cin

    # Lane-flatten channels-last rows (free reshape in HBM): (N, H, W*Cin).
    x2d = x_nhwc.reshape(N, H, WC)

    # ---------------- pass 1: global training-mode BN statistics ----------------
    TR = _row_tile(H, WC * elt, 1 << 20)                 # row-band blocks, <= ~1 MiB per block
    part_sum, part_sq = pl.pallas_call(
        _bn_stats_kernel,
        out_shape=(jax.ShapeDtypeStruct((N, 1, WC), jnp.float32),
                   jax.ShapeDtypeStruct((N, 1, WC), jnp.float32)),
        grid_spec=pltpu.PrefetchScalarGridSpec(
            num_scalar_prefetch=0,
            grid=(N, H // TR),
            in_specs=[pl.BlockSpec((1, TR, WC), lambda n, r: (n, r, 0))],
            out_specs=(pl.BlockSpec((1, 1, WC), lambda n, r: (n, 0, 0)),
                       pl.BlockSpec((1, 1, WC), lambda n, r: (n, 0, 0)))),
        compiler_params=pltpu.CompilerParams(
            dimension_semantics=("parallel", "arbitrary"),
            vmem_limit_bytes=_vmem_limit_bytes(TR * WC * elt + 2 * WC * 4)),
    )(x2d)

    cnt = jnp.float32(N * H * W)
    ch_sum = jnp.sum(part_sum[:, 0, :], axis=0).reshape(W, Cin).sum(axis=0)     # (Cin,)
    ch_sq = jnp.sum(part_sq[:, 0, :], axis=0).reshape(W, Cin).sum(axis=0)       # (Cin,)
    mean = ch_sum / cnt
    var = jnp.maximum(ch_sq / cnt - mean * mean, 0.0)     # biased (training-mode) variance
    # TODO(synk): single-pass E[x^2]-E[x]^2 in f32 can cancel for |mean| >> std at production
    #             batch sizes; use a shifted / two-pass variant if that regime matters.
    scale = gamma * jax.lax.rsqrt(var + EPS)
    shift = beta - mean * scale
    scale_row = jnp.tile(scale.reshape(1, Cin), (1, W)).astype(jnp.float32)     # (1, W*Cin)
    shift_row = jnp.tile(shift.reshape(1, Cin), (1, W)).astype(jnp.float32)

    # ---------------- conv weight packing ----------------
    PW = (W + 2) * Cin
    TH = _row_tile(H, W, 256)                 # M = TH*W <= 256 (multiple-of-8 rows, or full H)
    banded = (3 * PW * W * Cout * 2) <= (2 << 20)   # block-banded RHS only viable for small W
    if banded:
        # B[ky*PW + p*Cin + c, w*Cout + co] = Wt[ky, p - w, c, co] if 0 <= p - w < 3 else 0.
        off = jnp.arange(W + 2)[:, None] - jnp.arange(W)[None, :]               # (W+2, W)
        hit = (off >= 0) & (off < 3)
        g = conv_w_hwio[:, jnp.where(hit, off, 0)]                              # (3, W+2, W, Cin, Cout)
        g = g * hit[None, :, :, None, None].astype(conv_w_hwio.dtype)
        w_arr = jnp.transpose(g, (0, 1, 3, 2, 4)).reshape(3 * PW, W * Cout).astype(mxu_dtype)
    else:
        cout_pad = ((Cout + 127) // 128) * 128
        w_arr = jnp.pad(conv_w_hwio.reshape(9 * Cin, Cout),
                        ((0, 0), (0, cout_pad - Cout))).astype(mxu_dtype)
    bias_row = jnp.tile(conv_b.reshape(1, Cout), (1, W)).astype(jnp.float32)    # (1, W*Cout)

    # ---------------- pass 2: normalize + conv + tanh ----------------
    w_bytes = int(w_arr.shape[0]) * int(w_arr.shape[1]) * 2
    per_step = H * WC * elt + TH * W * Cout * 4 + w_bytes
    out = pl.pallas_call(
        functools.partial(_render_conv_kernel, cin=Cin, cout=Cout, th=TH, banded=banded),
        out_shape=jax.ShapeDtypeStruct((N, H, W * Cout), jnp.float32),
        grid_spec=pltpu.PrefetchScalarGridSpec(
            num_scalar_prefetch=0,
            grid=(N, H // TH),
            in_specs=[
                pl.BlockSpec((1, H, WC), lambda n, b: (n, 0, 0)),
                pl.BlockSpec((1, WC), lambda n, b: (0, 0)),
                pl.BlockSpec((1, WC), lambda n, b: (0, 0)),
                pl.BlockSpec(tuple(w_arr.shape), lambda n, b: (0, 0)),
                pl.BlockSpec((1, W * Cout), lambda n, b: (0, 0)),
            ],
            out_specs=pl.BlockSpec((1, TH, W * Cout), lambda n, b: (n, b, 0))),
        compiler_params=pltpu.CompilerParams(
            dimension_semantics=("parallel", "arbitrary"),      # N shards across v7x cores
            vmem_limit_bytes=_vmem_limit_bytes(per_step)),
    )(x2d, scale_row, shift_row, w_arr, bias_row)

    return out.reshape(N, H, W, Cout)


def render_block(x_nchw, gamma, beta, conv_w_hwio, conv_b, mxu_dtype=jnp.bfloat16):
    """PyTorch-layout adapter: x (N, Cin, H, W) -> (N, Cout, H, W). Prefer render_block_nhwc
    when the surrounding model is NHWC to avoid the two layout transposes."""
    x = jnp.transpose(x_nchw, (0, 2, 3, 1))
    y = render_block_nhwc(x, gamma, beta, conv_w_hwio, conv_b, mxu_dtype=mxu_dtype)
    return jnp.transpose(y, (0, 3, 1, 2))


def render_block_reference(x_nchw, gamma, beta, conv_w_hwio, conv_b):
    """Pure-JAX reference mirroring the PyTorch forward (training-mode BN)."""
    mean = jnp.mean(x_nchw, axis=(0, 2, 3), keepdims=True)
    var = jnp.mean((x_nchw - mean) ** 2, axis=(0, 2, 3), keepdims=True)
    a = (x_nchw - mean) / jnp.sqrt(var + EPS)
    a = a * gamma.reshape(1, -1, 1, 1) + beta.reshape(1, -1, 1, 1)
    a = jnp.maximum(a, 0.0)
    a_nhwc = jnp.transpose(a, (0, 2, 3, 1))
    y = jax.lax.conv_general_dilated(
        a_nhwc, conv_w_hwio, window_strides=(1, 1), padding="SAME",
        dimension_numbers=("NHWC", "HWIO", "NHWC"))
    y = jnp.tanh(y + conv_b.reshape(1, 1, 1, -1))
    return jnp.transpose(y, (0, 3, 1, 2))


# TODO(synk): BatchNorm running_mean/var buffer updates (training bookkeeping) are not emitted;
#             the forward pass uses batch statistics exactly like PyTorch train mode.

if __name__ == "__main__":
    # Small shapes consistent with the module (in_channels scaled down, out=3).
    N, Cin, Cout, H, W = 2, 32, 3, 16, 16

    key = jax.random.PRNGKey(0)
    kx, kg, kb, kw, kc = jax.random.split(key, 5)

    x = jax.random.normal(kx, (N, Cin, H, W), dtype=jnp.float32)
    gamma = 1.0 + 0.1 * jax.random.normal(kg, (Cin,), dtype=jnp.float32)
    beta = 0.1 * jax.random.normal(kb, (Cin,), dtype=jnp.float32)
    conv_w = 0.05 * jax.random.normal(kw, (3, 3, Cin, Cout), dtype=jnp.float32)  # HWIO
    conv_b = 0.05 * jax.random.normal(kc, (Cout,), dtype=jnp.float32)

    out = jax.block_until_ready(render_block(x, gamma, beta, conv_w, conv_b))
    ref = jax.block_until_ready(render_block_reference(x, gamma, beta, conv_w, conv_b))

    assert out.shape == (N, Cout, H, W)
    # bf16 MXU operands (per v6e/v7x guidance) vs. f32 reference -> bf16-appropriate tolerance.
    assert jnp.allclose(out, ref, atol=2e-2, rtol=2e-2), (
        "mismatch vs reference: max abs err = %e" % float(jnp.max(jnp.abs(out - ref))))
    print("KERNEL_OK")
</pallas_src>

<mosaic_0001>
module attributes {stable_mosaic.version = 11 : i64} {
  func.func @_bn_stats_kernel(%arg0: i32, %arg1: i32, %arg2: memref<1x16x512xf32, #tpu.memory_space<vmem>>, %arg3: memref<1x1x512xf32, #tpu.memory_space<vmem>>, %arg4: memref<1x1x512xf32, #tpu.memory_space<vmem>>) attributes {dimension_semantics = [#tpu.dimension_semantics<parallel>, #tpu.dimension_semantics<arbitrary>], iteration_bounds = array<i64: 2, 1>, scalar_prefetch = 0 : i64, scratch_operands = 0 : i64, tpu.core_type = #tpu.core_type<tc>, window_params = [{transform_indices = @transform_0, window_bounds = array<i64: 1, 16, 512>}, {transform_indices = @transform_1, window_bounds = array<i64: 1, 1, 512>}, {transform_indices = @transform_2, window_bounds = array<i64: 1, 1, 512>}]} {
    %c0 = arith.constant 0 : index
    %c0_0 = arith.constant 0 : index
    %c0_1 = arith.constant 0 : index
    %0 = vector.load %arg2[%c0, %c0_0, %c0_1] : memref<1x16x512xf32, #tpu.memory_space<vmem>>, vector<1x16x512xf32>
    %1 = vector.shape_cast %0 : vector<1x16x512xf32> to vector<16x512xf32>
    %cst = arith.constant dense<0.000000e+00> : vector<512xf32>
    %2 = vector.multi_reduction <add>, %1, %cst [0] : vector<16x512xf32> to vector<512xf32>
    %3 = vector.shape_cast %2 : vector<512xf32> to vector<1x512xf32>
    %4 = vector.shape_cast %3 : vector<1x512xf32> to vector<1x1x512xf32>
    %5 = arith.mulf %1, %1 : vector<16x512xf32>
    %cst_2 = arith.constant dense<0.000000e+00> : vector<512xf32>
    %6 = vector.multi_reduction <add>, %5, %cst_2 [0] : vector<16x512xf32> to vector<512xf32>
    %7 = vector.shape_cast %6 : vector<512xf32> to vector<1x512xf32>
    %8 = vector.shape_cast %7 : vector<1x512xf32> to vector<1x1x512xf32>
    %c0_i32 = arith.constant 0 : i32
    %9 = arith.cmpi eq, %arg1, %c0_i32 : i32
    %10 = arith.extui %9 : i1 to i32
    %c0_i32_3 = arith.constant 0 : i32
    %11 = arith.cmpi ne, %10, %c0_i32_3 : i32
    scf.if %11 {
      %c0_6 = arith.constant 0 : index
      %c0_7 = arith.constant 0 : index
      %c0_8 = arith.constant 0 : index
      %15 = vector.load %arg3[%c0_6, %c0_7, %c0_8] : memref<1x1x512xf32, #tpu.memory_space<vmem>>, vector<1x1x512xf32>
      tpu.vector_store %arg3[%c0_6, %c0_7, %c0_8], %4 {strides = array<i32>} : memref<1x1x512xf32, #tpu.memory_space<vmem>>, vector<1x1x512xf32>,
      %c0_9 = arith.constant 0 : index
      %c0_10 = arith.constant 0 : index
      %c0_11 = arith.constant 0 : index
      %16 = vector.load %arg4[%c0_9, %c0_10, %c0_11] : memref<1x1x512xf32, #tpu.memory_space<vmem>>, vector<1x1x512xf32>
      tpu.vector_store %arg4[%c0_9, %c0_10, %c0_11], %8 {strides = array<i32>} : memref<1x1x512xf32, #tpu.memory_space<vmem>>, vector<1x1x512xf32>,
    } else {
    }
    %c0_i32_4 = arith.constant 0 : i32
    %12 = arith.cmpi sgt, %arg1, %c0_i32_4 : i32
    %13 = arith.extui %12 : i1 to i32
    %c0_i32_5 = arith.constant 0 : i32
    %14 = arith.cmpi ne, %13, %c0_i32_5 : i32
    scf.if %14 {
      %c0_6 = arith.constant 0 : index
      %c0_7 = arith.constant 0 : index
      %c0_8 = arith.constant 0 : index
      %15 = vector.load %arg3[%c0_6, %c0_7, %c0_8] : memref<1x1x512xf32, #tpu.memory_space<vmem>>, vector<1x1x512xf32>
      %16 = arith.addf %15, %4 : vector<1x1x512xf32>
      %c0_9 = arith.constant 0 : index
      %c0_10 = arith.constant 0 : index
      %c0_11 = arith.constant 0 : index
      %17 = vector.load %arg3[%c0_9, %c0_10, %c0_11] : memref<1x1x512xf32, #tpu.memory_space<vmem>>, vector<1x1x512xf32>
      tpu.vector_store %arg3[%c0_9, %c0_10, %c0_11], %16 {strides = array<i32>} : memref<1x1x512xf32, #tpu.memory_space<vmem>>, vector<1x1x512xf32>,
      %c0_12 = arith.constant 0 : index
      %c0_13 = arith.constant 0 : index
      %c0_14 = arith.constant 0 : index
      %18 = vector.load %arg4[%c0_12, %c0_13, %c0_14] : memref<1x1x512xf32, #tpu.memory_space<vmem>>, vector<1x1x512xf32>
      %19 = arith.addf %18, %8 : vector<1x1x512xf32>
      %c0_15 = arith.constant 0 : index
      %c0_16 = arith.constant 0 : index
      %c0_17 = arith.constant 0 : index
      %20 = vector.load %arg4[%c0_15, %c0_16, %c0_17] : memref<1x1x512xf32, #tpu.memory_space<vmem>>, vector<1x1x512xf32>
      tpu.vector_store %arg4[%c0_15, %c0_16, %c0_17], %19 {strides = array<i32>} : memref<1x1x512xf32, #tpu.memory_space<vmem>>, vector<1x1x512xf32>,
    } else {
    }
    return
  }
  func.func @transform_0(%arg0: i32, %arg1: i32) -> (i32, i32, i32) {
    %c0_i32 = arith.constant 0 : i32
    %c0_i32_0 = arith.constant 0 : i32
    return %arg0, %arg1, %c0_i32 : i32, i32, i32
  }
  func.func @transform_1(%arg0: i32, %arg1: i32) -> (i32, i32, i32) {
    %c0_i32 = arith.constant 0 : i32
    %c0_i32_0 = arith.constant 0 : i32
    %c0_i32_1 = arith.constant 0 : i32
    return %arg0, %c0_i32, %c0_i32_0 : i32, i32, i32
  }
  func.func @transform_2(%arg0: i32, %arg1: i32) -> (i32, i32, i32) {
    %c0_i32 = arith.constant 0 : i32
    %c0_i32_0 = arith.constant 0 : i32
    %c0_i32_1 = arith.constant 0 : i32
    return %arg0, %c0_i32, %c0_i32_0 : i32, i32, i32
  }
}

</mosaic_0001>

<bundles_post_ra>
// kernel: tpu_custom_call.1
= control target key start
LH: loop header
LB: loop body
LE: loop exit
PB: predicated region body
PF: predicated region fallthrough
CT: control target
= control target key end

     0   :  { %8 = vsyncpa [#allocation3], 0  ;;  %s906_s0 = inlined_call_operand.hbm [shape: f32[2,16,512], index: 0, kind: input, shape index: {}]   ;;  %s907_s1 = inlined_call_operand.hbm [shape: f32[2,1,512], index: 1, kind: output, shape index: {0}]   ;;  %s908_s2 = inlined_call_operand.hbm [shape: f32[2,1,512], index: 2, kind: output, shape index: {1}]  }
   0x1   :  { %10 = vsyncpa [#allocation3 + $0x1], 0 }
   0x2   :  { %11 = vsyncpa [#allocation4], 0 }
   0x3   :  { %13 = vsyncpa [#allocation4 + $0x1], 0 }
   0x4   :  { %14 = vsyncpa [#allocation7], 0 }
   0x5   :  { %16 = vsyncpa [#allocation7 + $0x1], 0  ;;  %s738_s9 = smov 0   ;;  %s740_s10 = smov 0  }
   0x6   :  { %s742_s11 = smov 0   ;;  %s744_s12 = smov 0  }
   0x7   :  { %s746_s13 = smov 0   ;;  %s748_s14 = smov 0  }
   0x8 LB: > { %s488_s15 = sadd.s32 4294967295, %s719_s14   ;;  %s489_s16 = sadd.s32 4294967294, %s719_s14   ;;  %s719_s14 = sphi %s748_s14, %s22_s14   ;;  %s715_s13 = sphi %s746_s13, %s919_s13   ;;  %s711_s12 = sphi %s744_s12, %s918_s12   ;;  %s707_s11 = sphi %s742_s11, %s917_s11   ;;  %s703_s10 = sphi %s740_s10, %s916_s10   ;;  %s699_s9 = sphi %s738_s9, %s915_s9  }
   0x9   : > { %s34_s17 = sadd.s32 1, %s715_s13  ;;  %s43_s18 = sadd.s32 1, %s707_s11 }
   0xa   : > { %p36_p0 = scmp.ge.s32.totalorder %s34_s17, 2  ;;  %p50_p1 = scmp.ne.s32.totalorder %s707_s11, %s703_s10 }
   0xb   : > { %p51_p2 = scmp.eq.s32.totalorder %s719_s14, 0  ;;  %p56_p3 = scmp.ne.s32.totalorder %s703_s10, %s699_s9 }
   0xc   : > { %s921_s17 = smov (%p36_p0, %s34_s17), 0  ;;  %p57_p5 = scmp.eq.s32.totalorder %s488_s15, 0 }
   0xd   : > { %p779_p4 = por %p51_p2, %p50_p1  ;;  %s38_s20 = ssub.s32 %s715_s13, %s921_s17 }
   0xe   : > { %p80_p6 = scmp.eq.s32.totalorder %s488_s15, 1  ;;  %p41_p7 = scmp.eq.s32.totalorder %s38_s20, 0 }
   0xf   : > { %p785_p8 = por %p57_p5, %p56_p3  ;;  %p86_p10 = scmp.eq.s32.totalorder %s489_s16, 1 }
  0x10   : > { %p789_p9 = por %p80_p6, %p50_p1  ;;  %p491_p12 = scmp.ge.s32.totalorder %s719_s14, 2 }
  0x11   : > { %s794_s23 = scalar_select %p41_p7, %s707_s11, %s43_s18  }
  0x12   : > { %p796_p11 = por %p86_p10, %p56_p3  ;;  %p523_p13 = scmp.lt.s32.totalorder %s719_s14, 2 }
  0x13   : > { %s132_s25 = sand.u32 1, %s707_s11   ;;  %s505_s27 = sshll.u32 %s715_s13, 6 }
  0x14   : > { %s492_s26 = sshll.u32 %s132_s25, 6  ;;  %s144_s30 = scalar_lea.hbm %s906_s0, %s505_s27 }
  0x15   : > { %s136_s3 = scalar_lea.vmem [#allocation2], %s492_s26  ;;  %s145_s5 = sshll.u32 %s144_s30, 4  ;;  %s146_s5 = int_to_ptr.hbm [resolvable:$true] %s145_s5 }
  0x16   : > { %s147_s4 = sshll.u32 %s136_s3, 4  ;;  %p513_p0 = pnand %p523_p13, %p779_p4  ;;  %s148_s4 = int_to_ptr.vmem [resolvable:$true] %s147_s4 }
  0x17   : > { %p495_p1 = scmp.ge.s32.totalorder %s719_s14, 1  ;;  %s133_s6 = scalar_lea.sflag [#allocation3], %s132_s25 }
  0x18   : > { %s721_s7 = smov 512   ;;  %s722_s8 = smov 32  }
  0x19   : > { %515 = dma.hbm_to_vmem [thread:$0]  (!%p513_p0), %s146_s5, 1024, %s148_s4, %s133_s6, %s721_s7, %s721_s7, %s722_s8  }
  0x1a   : > { %p155_p2 = scmp.lt.s32.totalorder %s719_s14, 3 }
  0x1c   : > { %p156_p3 = pnand %p495_p1, %p155_p2 }
  0x1d   : > { %s812_s15 = sand.u32 (!%p156_p3), 1, %s703_s10  }
  0x1e   : > { %159 = sbr.rel (%p156_p3) target bundleno = 73 (0x49), region = 24  ;;  %s496_s16 = sshll.u32 (!%p156_p3), %s812_s15, 6 }
  0x1f   : > { %s162_s18 = scalar_lea.sflag (!%p156_p3), [#allocation3], %s812_s15  ;;  %s165_s20 = scalar_lea.vmem (!%p156_p3), [#allocation2], %s496_s16 }
  0x23   : > { %686 = dma.done.wait (%p785_p8), %s162_s18, 1024  }
  0x24   : > { %688 = vsyncadd (%p785_p8), %s162_s18, 4294966272  ;;  %v193_v0 = vld [vmem:[%s165_s20] sm:$0xff]  ;;  %v194_v1 = vld [vmem:[%s165_s20 + $0x8] sm:$0xff]  ;;  %v283_v6 = vlaneseq  ;;  %vm276_vm0 = vcmask 1040384   ;;  %vm278_vm1 = vcmask 1042434   ;;  %s497_s19 = sshll.u32 %s812_s15, 2 }
  0x25   : > { %v195_v2 = vld [vmem:[%s165_s20 + $0x10] sm:$0xff]  ;;  %v196_v3 = vld [vmem:[%s165_s20 + $0x18] sm:$0xff]  ;;  %v197_v4 = vld [vmem:[%s165_s20 + $0x20] sm:$0xff]  ;;  %v229_v7 = vmul.f32 %v193_v0, %v193_v0  ;;  %v230_v8 = vmul.f32 %v194_v1, %v194_v1  ;;  %s501_s21 = sshll.u32 %s711_s12, 2  ;;  %vm280_vm2 = vcmask 1041408   ;;  %s184_s30 = scalar_lea.vmem [#allocation5], %s497_s19 }
  0x26   : > { %v198_v5 = vld [vmem:[%s165_s20 + $0x28] sm:$0xff]  ;;  %v231_v9 = vmul.f32 %v195_v2, %v195_v2  ;;  %v199_v10 = vld [vmem:[%s165_s20 + $0x30] sm:$0xff]  ;;  %v200_v11 = vld [vmem:[%s165_s20 + $0x38] sm:$0xff]  ;;  %v201_v12 = vadd.f32 %v197_v4, %v193_v0  ;;  %v232_v14 = vmul.f32 %v196_v3, %v196_v3  ;;  %v233_v15 = vmul.f32 %v197_v4, %v197_v4  ;;  %s825_s27 = scalar_lea.hbm %s907_s1, %s501_s21  ;;  %s369_s29 = scalar_lea.hbm %s908_s2, %s501_s21 }
  0x27   : > { %v208_v13 = vadd.f32 %v198_v5, %v194_v1  ;;  %v215_v16 = vadd.f32 %v199_v10, %v195_v2  ;;  %v222_v17 = vadd.f32 %v200_v11, %v196_v3  ;;  %v234_v18 = vmul.f32 %v198_v5, %v198_v5  ;;  %s357_s3 = sshll.u32 %s184_s30, 4  ;;  %s359_s4 = sshll.u32 %s825_s27, 4  ;;  %s358_s3 = int_to_ptr.vmem [resolvable:$true] %s357_s3  ;;  %s360_s4 = int_to_ptr.hbm [resolvable:$true] %s359_s4 }
  0x28   : > { %v235_v19 = vmul.f32 %v199_v10, %v199_v10  ;;  %v202_v20 = vrot.slane %v201_v12, 4  ;;  %v236_v22 = vmul.f32 %v200_v11, %v200_v11  ;;  %v237_v23 = vadd.f32 %v233_v15, %v229_v7  ;;  %s835_s5 = scalar_lea.vmem [#allocation6], %s497_s19  ;;  %s373_s7 = sshll.u32 %s369_s29, 4  ;;  %s851_s7 = int_to_ptr.hbm [resolvable:$true] %s373_s7 }
  0x29   : > { %v209_v21 = vrot.slane %v208_v13, 4  ;;  %v216_v24 = vrot.slane %v215_v16, 4  ;;  %v223_v25 = vrot.slane %v222_v17, 4  ;;  %v244_v26 = vadd.f32 %v234_v18, %v230_v8  ;;  %s371_s6 = sshll.u32 %s835_s5, 4  ;;  %s340_s8 = scalar_lea.sflag [#allocation4], %s812_s15  ;;  %s846_s6 = int_to_ptr.vmem [resolvable:$true] %s371_s6 }
  0x2a   : > { %v251_v27 = vadd.f32 %v235_v19, %v231_v9  ;;  %v203_v28 = vadd.f32 %v202_v20, %v201_v12  ;;  %v238_v30 = vrot.slane %v237_v23, 4  ;;  %v258_v31 = vadd.f32 %v236_v22, %v232_v14  ;;  %s619_s16 = sshra.s32 %s360_s4, 4  ;;  %s625_s21 = scalar_lea.hbm %s907_s1, 8  ;;  %s620_s16 = int_to_ptr.hbm [resolvable:$true] %s619_s16 }
  0x2b   : > { %v210_v29 = vadd.f32 %v209_v21, %v208_v13  ;;  %v217_v32 = vadd.f32 %v216_v24, %v215_v16  ;;  %v224_v33 = vadd.f32 %v223_v25, %v222_v17  ;;  %v245_v34 = vrot.slane %v244_v26, 4  ;;  %s621_s18 = scalar_lea.hbm %s620_s16, 4  ;;  %p626_p7 = scmp.lt.s32.totalorder %s620_s16, %s907_s1 }
  0x2c   : > { %v252_v35 = vrot.slane %v251_v27, 4  ;;  %v204_v36 = vrot.slane %v203_v28, 2  ;;  %v239_v38 = vadd.f32 %v238_v30, %v237_v23  ;;  %v259_v39 = vrot.slane %v258_v31, 4  ;;  %p622_p4 = scmp.ne.s32.totalorder %s620_s16, %s621_s18  ;;  %p627_p8 = scmp.lt.s32.totalorder %s625_s21, %s621_s18 }
  0x2d   : > { %v211_v37 = vrot.slane %v210_v29, 2  ;;  %v218_v40 = vrot.slane %v217_v32, 2  ;;  %v225_v41 = vrot.slane %v224_v33, 2  ;;  %v246_v42 = vadd.f32 %v245_v34, %v244_v26 }
  0x2e   : > { %v253_v43 = vadd.f32 %v252_v35, %v251_v27  ;;  %v205_v44 = vadd.f32 %v204_v36, %v203_v28  ;;  %v240_v46 = vrot.slane %v239_v38, 2  ;;  %v260_v47 = vadd.f32 %v259_v39, %v258_v31  ;;  %p623_p5 = pnand %p622_p4, %p789_p9  ;;  %p628_p10 = por %p627_p8, %p626_p7 }
  0x2f   : > { %v212_v45 = vadd.f32 %v211_v37, %v210_v29  ;;  %v219_v48 = vadd.f32 %v218_v40, %v217_v32  ;;  %v226_v49 = vadd.f32 %v225_v41, %v224_v33  ;;  %v247_v50 = vrot.slane %v246_v42, 2 }
  0x30   : > { %v254_v51 = vrot.slane %v253_v43, 2  ;;  %v206_v52 = vrot.slane %v205_v44, 1  ;;  %v241_v54 = vadd.f32 %v240_v46, %v239_v38  ;;  %v261_v55 = vrot.slane %v260_v47, 2  ;;  %p624_p6 = pneg %p623_p5 }
  0x31   : > { %v213_v53 = vrot.slane %v212_v45, 1  ;;  %v220_v56 = vrot.slane %v219_v48, 1  ;;  %v227_v57 = vrot.slane %v226_v49, 1  ;;  %v248_v58 = vadd.f32 %v247_v50, %v246_v42 }
  0x32   : > { %v255_v59 = vadd.f32 %v254_v51, %v253_v43  ;;  %v207_v60 = vadd.f32 %v206_v52, %v205_v44  ;;  %v242_v62 = vrot.slane %v241_v54, 1  ;;  %v262_v63 = vadd.f32 %v261_v55, %v260_v47  ;;  %p629_p13 = pnand %p628_p10, %p624_p6 }
  0x33   : > { %v214_v61 = vadd.f32 %v213_v53, %v212_v45  ;;  %v221_v0 = vadd.f32 %v220_v56, %v219_v48  ;;  %v228_v1 = vadd.f32 %v227_v57, %v226_v49  ;;  %v249_v2 = vrot.slane %v248_v58, 1 }
  0x34   : > { %v256_v3 = vrot.slane %v255_v59, 1  ;;  %v243_v5 = vadd.f32 %v242_v62, %v241_v54  ;;  %v263_v7 = vrot.slane %v262_v63, 1  ;;  %vm840_vm3 = vcmp.lt.s32.totalorder %v283_v6, 512 }
  0x35   : > { %v273_v4 = vrot.slane %v214_v61, 7  ;;  %v274_v8 = vrot.slane %v221_v0, 6  ;;  %v275_v9 = vrot.slane %v228_v1, 5  ;;  %v250_v10 = vadd.f32 %v249_v2, %v248_v58 }
  0x36   : > { %v257_v11 = vadd.f32 %v256_v3, %v255_v59  ;;  %v264_v14 = vadd.f32 %v263_v7, %v262_v63 }
  0x37   : > { %v277_v12 = vsel %vm276_vm0, %v207_v60, %v273_v4  ;;  %v279_v15 = vsel %vm278_vm1, %v274_v8, %v275_v9  ;;  %v292_v16 = vrot.slane %v250_v10, 7 }
  0x38   : > { %v293_v17 = vrot.slane %v257_v11, 6  ;;  %v281_v18 = vsel %vm280_vm2, %v277_v12, %v279_v15  ;;  %v294_v19 = vrot.slane %v264_v14, 5 }
  0x39   : > { %287 = vst.msk [vmem:[%s184_s30] sm:$0xf] %vm840_vm3, %v281_v18  ;;  %v295_v6 = vsel %vm276_vm0, %v243_v5, %v292_v16 }
  0x3a   : > { %v296_v20 = vsel %vm278_vm1, %v293_v17, %v294_v19 }
  0x3b   : > { %632 = shalt.err (!%p629_p13)
}
  0x3c   : > { %508 = dma.vmem_to_hbm [thread:$0]  (%p789_p9), %s358_s3, 64, %s360_s4, %s340_s8   ;;  %v297_v21 = vsel %vm280_vm2, %v295_v6, %v296_v20 }
  0x3d   : > { %299 = vst.msk [vmem:[%s835_s5] sm:$0xf] %vm840_vm3, %v297_v21  ;;  %s345_s27 = scalar_lea.sflag [#allocation7], %s812_s15  ;;  %s647_s12 = sshra.s32 %s851_s7, 4  ;;  %s648_s12 = int_to_ptr.hbm [resolvable:$true] %s647_s12 }
  0x3e   : > { %s649_s28 = scalar_lea.hbm %s648_s12, 4  ;;  %s653_s16 = scalar_lea.hbm %s908_s2, 8 }
  0x3f   : > { %p650_p0 = scmp.ne.s32.totalorder %s648_s12, %s649_s28  ;;  %p654_p3 = scmp.lt.s32.totalorder %s648_s12, %s908_s2 }
  0x40   : > { %p655_p4 = scmp.lt.s32.totalorder %s653_s16, %s649_s28 }
  0x41   : > { %p651_p1 = pnand %p650_p0, %p789_p9 }
  0x42   : > { %p656_p5 = por %p655_p4, %p654_p3 }
  0x43   : > { %p652_p2 = pneg %p651_p1 }
  0x45   : > { %p657_p6 = pnand %p656_p5, %p652_p2 }
  0x47   : > { %660 = shalt.err (!%p657_p6)
}
  0x48   : > { %509 = dma.vmem_to_hbm [thread:$0]  (%p789_p9), %s846_s6, 64, %s851_s7, %s345_s27  }
  0x49 PF: > { %s385_s15 = sand.u32 1, %s699_s9   ;;  %p517_p7 = pnand %p491_p12, %p796_p11 }
  0x4a   : > { %s386_s3 = scalar_lea.sflag [#allocation4], %s385_s15 }
  0x4b   : > { %p518_p8 = pneg %p517_p7 }
  0x4d   : > { %690 = dma.done.wait (%p518_p8), %s386_s3, 64  }
  0x4e   : > { %692 = vsyncadd (%p518_p8), %s386_s3, 4294967232  ;;  %s396_s4 = scalar_lea.sflag [#allocation7], %s385_s15 }
  0x4f   : > { %694 = dma.done.wait (%p518_p8), %s396_s4, 64  }
  0x50   : > { %696 = vsyncadd (%p518_p8), %s396_s4, 4294967232  ;;  %s22_s14 = sadd.s32 1, %s719_s14   ;;  %s915_s9 = smov %s703_s10 }
  0x51   : > { %p19_p10 = scmp.ge.s32.totalorder %s22_s14, 4   ;;  %s916_s10 = smov %s707_s11 }
  0x52   : > { %s917_s11 = smov %s794_s23  ;;  %s918_s12 = smov %s715_s13 }
  0x53   : > { %s919_s13 = smov %s921_s17  ;;  %21 = sbr.rel (!%p19_p10) target bundleno = 8 (0x8), region = 94 }
  0x58   :  { %402 = vsyncpa [#allocation3], 1 }
  0x59   :  { %404 = vsyncpa [#allocation3 + $0x1], 1 }
  0x5a   :  { %405 = vsyncpa [#allocation4], 1 }
  0x5b   :  { %407 = vsyncpa [#allocation4 + $0x1], 1 }
  0x5c   :  { %408 = vsyncpa [#allocation7], 1 }
  0x5d   :  { %410 = vsyncpa [#allocation7 + $0x1], 1 }

</bundles_post_ra>
